<compile_context>
chip_gen: v7x
topology: tpu7x:2x2x1
jax: 0.10.0
libtpu: 0.0.40
codegen_flags: <defaults>
</compile_context>

<pallas_src>
import functools
import math

import jax
import jax.numpy as jnp
from jax import lax
from jax.experimental import pallas as pl
from jax.experimental.pallas import tpu as pltpu


def relation_kernel(fv_ref, geom_ref, w_ref, b_ref, out_ref, *, dim_mm):
    # ReLU on input features (module adopts pre-non-linear-activated features).
    fv = jnp.maximum(fv_ref[...], 0)                           # bf16 [N, dim_v]

    # Fused key|query|visual projection: single lane-dense MXU pass, f32 acc.
    proj = jnp.dot(fv, w_ref[...], preferred_element_type=jnp.float32)
    proj = proj + b_ref[...]                                   # f32 [N, 2*dim_mm+dim_o]
    key = proj[:, :dim_mm]                                     # f32 [N, dim_mm]
    query = proj[:, dim_mm:2 * dim_mm]                         # f32 [N, dim_mm]
    vis = proj[:, 2 * dim_mm:].astype(jnp.bfloat16)            # bf16 [N, dim_o]

    # visual_weight[i, j] = <key[i], query[j]> / sqrt(dim_key)
    # (contract last dims of both operands -> no transpose of query needed)
    vw = lax.dot_general(key, query,
                         dimension_numbers=(((1,), (1,)), ((), ())),
                         preferred_element_type=jnp.float32)
    vw = vw * jnp.float32(1.0 / math.sqrt(dim_mm))

    # attention = exp(vw) * geometry_weight; geom diagonal is pre-zeroed in the
    # wrapper (== attention[i, i] = 0). Row-max subtraction cancels in the
    # normalization below and prevents exp overflow.
    vw = vw - jnp.max(vw, axis=1, keepdims=True)
    att = jnp.exp(vw) * geom_ref[...]                          # f32 [N, N]

    # Normalize AFTER the matmul: out[i] = (att[i] @ vis) / (rowsum[i] + 1e-10)
    inv = pl.reciprocal(jnp.sum(att, axis=1, keepdims=True) + 1e-10, approx=True)
    out = jnp.dot(att.astype(jnp.bfloat16), vis,
                  preferred_element_type=jnp.float32)          # f32 [N, dim_o]
    out_ref[...] = out * inv


def relation_module(feature_visual, geometry_weight, params):
    """feature_visual: [B, N, dim_v] f32; geometry_weight: [B, N, N] f32."""
    b, n, dim_v = feature_visual.shape
    dim_mm = params["wk"].shape[1]
    dim_o = params["wv"].shape[1]
    p = 2 * dim_mm + dim_o

    # Pack the three projection weights into one lane-dense bf16 operand.
    w_kqv = jnp.concatenate([params["wk"], params["wq"], params["wv"]],
                            axis=1).astype(jnp.bfloat16)        # [dim_v, p]
    b_kqv = jnp.concatenate([params["bk"], params["bq"], params["bv"]],
                            axis=1).astype(jnp.float32)         # [1, p]

    fv = feature_visual.astype(jnp.bfloat16)
    # attention[i, i] = 0  <=>  zero the diagonal of geometry_weight once here.
    geom = geometry_weight * (1.0 - jnp.eye(n, dtype=geometry_weight.dtype))

    kernel = functools.partial(relation_kernel, dim_mm=dim_mm)
    grid_spec = pltpu.PrefetchScalarGridSpec(
        num_scalar_prefetch=0,
        grid=(b,),
        in_specs=[
            pl.BlockSpec((None, n, dim_v), lambda i: (i, 0, 0)),
            pl.BlockSpec((None, n, n), lambda i: (i, 0, 0)),
            pl.BlockSpec((dim_v, p), lambda i: (0, 0)),   # resident across grid
            pl.BlockSpec((1, p), lambda i: (0, 0)),       # resident across grid
        ],
        out_specs=pl.BlockSpec((None, n, dim_o), lambda i: (i, 0, 0)),
    )
    return pl.pallas_call(
        kernel,
        out_shape=jax.ShapeDtypeStruct((b, n, dim_o), jnp.float32),
        grid_spec=grid_spec,
        compiler_params=pltpu.CompilerParams(
            dimension_semantics=("parallel",),
            vmem_limit_bytes=32 * 1024 * 1024,
        ),
    )(fv, geom, w_kqv, b_kqv)


def relation_module_reference(feature_visual, geometry_weight, params):
    """Pure-JAX f32 reference matching the PyTorch forward (for validation)."""
    fv = jnp.maximum(feature_visual, 0.0)
    key = fv @ params["wk"] + params["bk"]
    query = fv @ params["wq"] + params["bq"]
    vis = fv @ params["wv"] + params["bv"]
    dim_key = params["wk"].shape[1]
    vw = jnp.einsum("bik,bjk->bij", key, query) / jnp.sqrt(jnp.float32(dim_key))
    att = jnp.exp(vw) * geometry_weight
    n = geometry_weight.shape[-1]
    att = att * (1.0 - jnp.eye(n, dtype=att.dtype))
    att = att / (jnp.sum(att, axis=-1, keepdims=True) + 1e-10)
    return jnp.einsum("bij,bjd->bid", att, vis)


def geometry_transform_v2(rois, wg, bg, dim_mm):
    # TODO(synk): exact Geometry_Transform_v2 source was not provided; this is the
    # standard Relation-Networks geometry path (pairwise log-ratio box features ->
    # sinusoidal embedding of width dim_mm -> Linear(dim_mm, 1) -> ReLU), computed
    # in plain JAX (fuse per-tile into the kernel for large N).
    x1, y1, x2, y2 = rois[:, 0], rois[:, 1], rois[:, 2], rois[:, 3]
    cx, cy = (x1 + x2) * 0.5, (y1 + y2) * 0.5
    w, h = (x2 - x1) + 1.0, (y2 - y1) + 1.0
    dx = jnp.log(jnp.abs(cx[:, None] - cx[None, :]) / w[:, None] + 1e-3)
    dy = jnp.log(jnp.abs(cy[:, None] - cy[None, :]) / h[:, None] + 1e-3)
    dw = jnp.log(w[None, :] / w[:, None])
    dh = jnp.log(h[None, :] / h[:, None])
    g = jnp.stack([dx, dy, dw, dh], axis=-1)                  # [N, N, 4]
    feat_per = dim_mm // 8                                    # 4 feats * (sin, cos)
    dim_t = 1000.0 ** (jnp.arange(feat_per, dtype=jnp.float32) / feat_per)
    pos = g[..., None] * 100.0 / dim_t                        # [N, N, 4, feat_per]
    emb = jnp.concatenate([jnp.sin(pos), jnp.cos(pos)], axis=-1)
    emb = emb.reshape(g.shape[0], g.shape[1], dim_mm)
    geo = jnp.maximum(emb @ wg + bg, 0.0)[..., 0]             # [N, N]
    return geo


def init_params(key, dim_v, dim_o, dim_mm):
    ks = jax.random.split(key, 8)

    def lin(kw, kb, din, dout):
        bound = 1.0 / math.sqrt(din)
        w = jax.random.uniform(kw, (din, dout), jnp.float32, -bound, bound)
        b = jax.random.uniform(kb, (1, dout), jnp.float32, -bound, bound)
        return w, b

    wk, bk = lin(ks[0], ks[1], dim_v, dim_mm)
    wq, bq = lin(ks[2], ks[3], dim_v, dim_mm)
    wv, bv = lin(ks[4], ks[5], dim_v, dim_o)
    wg, bg = lin(ks[6], ks[7], dim_mm, 1)
    return {"wk": wk, "bk": bk, "wq": wq, "bq": bq,
            "wv": wv, "bv": bv, "wg": wg, "bg": bg[0]}


if __name__ == "__main__":
    # Small demo shapes: B relation instances, N rois each; lane-dense packed
    # projection (2*dim_mm + dim_o = 256) and lane-dense output (dim_o = 128).
    B, N, dim_v, dim_o, dim_mm = 2, 16, 128, 128, 64

    key = jax.random.PRNGKey(0)
    k_fv, k_xy, k_wh, k_p = jax.random.split(key, 4)

    feature_visual = jax.random.normal(k_fv, (B, N, dim_v), jnp.float32)
    xy = jax.random.uniform(k_xy, (B, N, 2), jnp.float32, 0.0, 100.0)
    wh = jax.random.uniform(k_wh, (B, N, 2), jnp.float32, 10.0, 50.0)
    rois = jnp.concatenate([xy, xy + wh], axis=-1)            # [B, N, 4] boxes

    params = init_params(k_p, dim_v, dim_o, dim_mm)

    geometry_weight = jax.vmap(
        lambda r: geometry_transform_v2(r, params["wg"], params["bg"], dim_mm)
    )(rois)                                                   # [B, N, N]

    out = relation_module(feature_visual, geometry_weight, params)
    jax.block_until_ready(out)
    assert out.shape == (B, N, dim_o)

    ref = relation_module_reference(feature_visual, geometry_weight, params)
    max_err = float(jnp.max(jnp.abs(out - ref)))
    assert jnp.all(jnp.isfinite(out))
    assert max_err < 1e-1, f"max abs err vs f32 reference: {max_err}"

    print("KERNEL_OK")
</pallas_src>

<mosaic_0001>
module attributes {stable_mosaic.version = 11 : i64} {
  func.func @relation_kernel(%arg0: i32, %arg1: memref<1x16x128xbf16, #tpu.memory_space<vmem>>, %arg2: memref<1x16x16xf32, #tpu.memory_space<vmem>>, %arg3: memref<128x256xbf16, #tpu.memory_space<vmem>>, %arg4: memref<1x256xf32, #tpu.memory_space<vmem>>, %arg5: memref<1x16x128xf32, #tpu.memory_space<vmem>>) attributes {dimension_semantics = [#tpu.dimension_semantics<parallel>], iteration_bounds = array<i64: 2>, scalar_prefetch = 0 : i64, scratch_operands = 0 : i64, tpu.core_type = #tpu.core_type<tc>, window_params = [{transform_indices = @transform_0, window_bounds = array<i64: 1, 16, 128>}, {transform_indices = @transform_1, window_bounds = array<i64: 1, 16, 16>}, {pipeline_mode = #tpu.pipeline_mode<synchronous>, transform_indices = @transform_2, window_bounds = array<i64: 128, 256>}, {pipeline_mode = #tpu.pipeline_mode<synchronous>, transform_indices = @transform_3, window_bounds = array<i64: 1, 256>}, {transform_indices = @transform_4, window_bounds = array<i64: 1, 16, 128>}]} {
    %c0 = arith.constant 0 : index
    %c0_0 = arith.constant 0 : index
    %c0_1 = arith.constant 0 : index
    %0 = vector.load %arg1[%c0, %c0_0, %c0_1] : memref<1x16x128xbf16, #tpu.memory_space<vmem>>, vector<1x16x128xbf16>
    %1 = vector.shape_cast %0 : vector<1x16x128xbf16> to vector<16x128xbf16>
    %cst = arith.constant 0.000000e+00 : bf16
    %2 = vector.broadcast %cst : bf16 to vector<16x128xbf16>
    %3 = arith.maximumf %1, %2 : vector<16x128xbf16>
    %c0_2 = arith.constant 0 : index
    %c0_3 = arith.constant 0 : index
    %4 = vector.load %arg3[%c0_2, %c0_3] : memref<128x256xbf16, #tpu.memory_space<vmem>>, vector<128x256xbf16>
    %cst_4 = arith.constant dense<0.000000e+00> : vector<16x256xf32>
    %5 = tpu.matmul %3, %4, %cst_4 {dimension_numbers = #tpu.dot_dimension_numbers<[1], [0], [0], [1], [0, 0, 1, 1], [], []>} : vector<16x128xbf16>, vector<128x256xbf16>, vector<16x256xf32> -> vector<16x256xf32>
    %c0_5 = arith.constant 0 : index
    %c0_6 = arith.constant 0 : index
    %6 = vector.load %arg4[%c0_5, %c0_6] : memref<1x256xf32, #tpu.memory_space<vmem>>, vector<1x256xf32>
    %7 = vector.broadcast %6 : vector<1x256xf32> to vector<16x256xf32>
    %8 = arith.addf %5, %7 : vector<16x256xf32>
    %9 = vector.extract_strided_slice %8 {offsets = [0, 0], sizes = [16, 64], strides = [1, 1]} : vector<16x256xf32> to vector<16x64xf32>
    %10 = vector.extract_strided_slice %8 {offsets = [0, 64], sizes = [16, 64], strides = [1, 1]} : vector<16x256xf32> to vector<16x64xf32>
    %11 = vector.extract_strided_slice %8 {offsets = [0, 128], sizes = [16, 128], strides = [1, 1]} : vector<16x256xf32> to vector<16x128xf32>
    %12 = arith.truncf %11 : vector<16x128xf32> to vector<16x128xbf16>
    %cst_7 = arith.constant dense<0.000000e+00> : vector<16x16xf32>
    %13 = tpu.matmul %9, %10, %cst_7 {dimension_numbers = #tpu.dot_dimension_numbers<[1], [1], [0], [0], [0, 0, 1, 0], [], []>} : vector<16x64xf32>, vector<16x64xf32>, vector<16x16xf32> -> vector<16x16xf32>
    %cst_8 = arith.constant 1.250000e-01 : f32
    %14 = vector.broadcast %cst_8 : f32 to vector<16x16xf32>
    %15 = arith.mulf %13, %14 : vector<16x16xf32>
    %cst_9 = arith.constant dense<0xFF800000> : vector<16xf32>
    %16 = vector.multi_reduction <maximumf>, %15, %cst_9 [1] : vector<16x16xf32> to vector<16xf32>
    %17 = vector.shape_cast %16 : vector<16xf32> to vector<16x1xf32>
    %18 = vector.broadcast %17 : vector<16x1xf32> to vector<16x16xf32>
    %19 = arith.subf %15, %18 : vector<16x16xf32>
    %20 = math.exp %19 : vector<16x16xf32>
    %c0_10 = arith.constant 0 : index
    %c0_11 = arith.constant 0 : index
    %c0_12 = arith.constant 0 : index
    %21 = vector.load %arg2[%c0_10, %c0_11, %c0_12] : memref<1x16x16xf32, #tpu.memory_space<vmem>>, vector<1x16x16xf32>
    %22 = vector.shape_cast %21 : vector<1x16x16xf32> to vector<16x16xf32>
    %23 = arith.mulf %20, %22 : vector<16x16xf32>
    %cst_13 = arith.constant dense<0.000000e+00> : vector<16xf32>
    %24 = vector.multi_reduction <add>, %23, %cst_13 [1] : vector<16x16xf32> to vector<16xf32>
    %25 = vector.shape_cast %24 : vector<16xf32> to vector<16x1xf32>
    %cst_14 = arith.constant 1.000000e-10 : f32
    %26 = vector.broadcast %cst_14 : f32 to vector<16x1xf32>
    %27 = arith.addf %25, %26 : vector<16x1xf32>
    %28 = tpu.reciprocal %27 {approx = true} : vector<16x1xf32> -> vector<16x1xf32>
    %29 = arith.truncf %23 : vector<16x16xf32> to vector<16x16xbf16>
    %cst_15 = arith.constant dense<0.000000e+00> : vector<16x128xf32>
    %30 = tpu.matmul %29, %12, %cst_15 {dimension_numbers = #tpu.dot_dimension_numbers<[1], [0], [0], [1], [0, 0, 1, 1], [], []>} : vector<16x16xbf16>, vector<16x128xbf16>, vector<16x128xf32> -> vector<16x128xf32>
    %31 = vector.broadcast %28 : vector<16x1xf32> to vector<16x128xf32>
    %32 = arith.mulf %30, %31 : vector<16x128xf32>
    %c0_16 = arith.constant 0 : index
    %c0_17 = arith.constant 0 : index
    %c0_18 = arith.constant 0 : index
    %33 = vector.load %arg5[%c0_16, %c0_17, %c0_18] : memref<1x16x128xf32, #tpu.memory_space<vmem>>, vector<1x16x128xf32>
    %34 = vector.shape_cast %33 : vector<1x16x128xf32> to vector<16x128xf32>
    %35 = vector.shape_cast %32 : vector<16x128xf32> to vector<1x16x128xf32>
    tpu.vector_store %arg5[%c0_16, %c0_17, %c0_18], %35 {strides = array<i32>} : memref<1x16x128xf32, #tpu.memory_space<vmem>>, vector<1x16x128xf32>,
    return
  }
  func.func @transform_0(%arg0: i32) -> (i32, i32, i32) {
    %c0_i32 = arith.constant 0 : i32
    %c0_i32_0 = arith.constant 0 : i32
    %c0_i32_1 = arith.constant 0 : i32
    return %arg0, %c0_i32, %c0_i32_0 : i32, i32, i32
  }
  func.func @transform_1(%arg0: i32) -> (i32, i32, i32) {
    %c0_i32 = arith.constant 0 : i32
    %c0_i32_0 = arith.constant 0 : i32
    %c0_i32_1 = arith.constant 0 : i32
    return %arg0, %c0_i32, %c0_i32_0 : i32, i32, i32
  }
  func.func @transform_2(%arg0: i32) -> (i32, i32) {
    %c0_i32 = arith.constant 0 : i32
    %c0_i32_0 = arith.constant 0 : i32
    %c0_i32_1 = arith.constant 0 : i32
    return %c0_i32, %c0_i32_0 : i32, i32
  }
  func.func @transform_3(%arg0: i32) -> (i32, i32) {
    %c0_i32 = arith.constant 0 : i32
    %c0_i32_0 = arith.constant 0 : i32
    %c0_i32_1 = arith.constant 0 : i32
    return %c0_i32, %c0_i32_0 : i32, i32
  }
  func.func @transform_4(%arg0: i32) -> (i32, i32, i32) {
    %c0_i32 = arith.constant 0 : i32
    %c0_i32_0 = arith.constant 0 : i32
    %c0_i32_1 = arith.constant 0 : i32
    return %arg0, %c0_i32, %c0_i32_0 : i32, i32, i32
  }
}

</mosaic_0001>

<bundles_post_ra>
// kernel: tpu_custom_call.1
= control target key start
LH: loop header
LB: loop body
LE: loop exit
PB: predicated region body
PF: predicated region fallthrough
CT: control target
= control target key end

     0   :  { %s1378_s0 = inlined_call_operand.hbm [shape: bf16[2,16,128], index: 0, kind: input, shape index: {}]   ;;  %s1379_s1 = inlined_call_operand.hbm [shape: f32[2,16,16], index: 1, kind: input, shape index: {}]   ;;  %s1380_s2 = inlined_call_operand.hbm [shape: bf16[128,256], index: 2, kind: input, shape index: {}]   ;;  %s1381_s3 = inlined_call_operand.vmem [shape: f32[1,256], index: 3, kind: input, shape index: {}]   ;;  %s1382_s4 = inlined_call_operand.hbm [shape: f32[2,16,128], index: 4, kind: output, shape index: {}]  }
   0x1   :  { %1388 = sst [smem:[#allocation13_spill]] %s1378_s0 }
   0x2   :  { %1389 = sst [smem:[#allocation14_spill]] %s1380_s2 }
   0x3   :  { %9 = vsyncpa [#allocation3], 0 }
   0x4   :  { %11 = vsyncpa [#allocation3 + $0x1], 0 }
   0x5   :  { %12 = vsyncpa [#allocation6], 0 }
   0x6   :  { %14 = vsyncpa [#allocation6 + $0x1], 0 }
   0x7   :  { %15 = vsyncpa [#allocation4], 0 }
   0x8   :  { %17 = vsyncpa [#allocation4 + $0x1], 0  ;;  %s1102_s15 = smov 0   ;;  %s1104_s16 = smov 0  }
   0x9   :  { %s1106_s17 = smov 0   ;;  %s1108_s18 = smov 0  }
   0xa LB: > { %s1123_s19 = sadd.s32 4294967295, %s1061_s18   ;;  %s720_s20 = sadd.s32 4294967294, %s1061_s18   ;;  %s1061_s18 = sphi %s1108_s18, %s1410_s18   ;;  %s1057_s17 = sphi %s1106_s17, %s1409_s17   ;;  %s1053_s16 = sphi %s1104_s16, %s1408_s16   ;;  %s1049_s15 = sphi %s1102_s15, %s1407_s15  }
   0xb   : > { %p43_p0 = scmp.ne.s32.totalorder %s1053_s16, %s1049_s15  ;;  %p1383_p1 = scmp.eq.s32.totalorder %s1123_s19, 0 }
   0xc   : > { %p141_p3 = scmp.eq.s32.totalorder %s720_s20, 1  ;;  %p721_p5 = scmp.ge.s32.totalorder %s1061_s18, 1 }
   0xd   : > { %p1132_p4 = por %p1383_p1, %p43_p0  ;;  %p148_p7 = scmp.lt.s32.totalorder %s1061_s18, 3 }
   0xe   : > { %p1137_p6 = por %p141_p3, %p43_p0  ;;  %s1063_s24 = smov [#allocation7]  }
   0xf   : > { %s1390_s21 = scalar_select %p1132_p4, 1, 0 }
  0x10   : > { %s1391_s22 = scalar_select %p1137_p6, 1, 0 }
  0x11   : > { %p1142_p8 = pnand %p721_p5, %p148_p7  ;;  %s160_s25 = sshll.u32 %s1063_s24, 4  ;;  %s1146_s25 = int_to_ptr.vmem [resolvable:$true] %s160_s25 }
  0x12   : > { %s1158_s27 = sadd.s32 1, %s1061_s18   ;;  %s30_s28 = sadd.s32 1, %s1057_s17 }
  0x13   : > { %s1392_s23 = scalar_select %p1142_p8, 1, 0 }
  0x14   : > { %p800_p9 = pneg %p1142_p8  ;;  %s27_s29 = ssub.s32 %s1061_s18, %s1158_s27 }
  0x15   : > { %s1394_s2 = sld [smem:[#allocation14_spill]] }
  0x16   : > { %p1153_p11 = pnand %p800_p9, %p1383_p1 }
  0x18   : > { %p901_p13 = pneg %p1153_p11 }
  0x1b   : > { %s899_s6 = scalar_lea.hbm %s1394_s2, 2048 }
  0x1c   : > { %p900_p12 = scmp.ne.s32.totalorder %s1394_s2, %s899_s6  ;;  %p906_p5 = scmp.lt.u32.totalorder %s899_s6, %s1394_s2 }
  0x1e   : > { %p902_p0 = pnand %p901_p13, %p900_p12 }
  0x20   : > { %p903_p3 = pneg %p902_p0 }
  0x22   : > { %p908_p7 = pnand %p906_p5, %p903_p3 }
  0x24   : > { %911 = shalt.err (!%p908_p7)
}
  0x25   : > { %s912_s11 = scalar_lea.vmem %s1146_s25, 2048  ;;  %p920_p2 = scmp.lt.s32.totalorder %s1146_s25, %s1146_s25 }
  0x26   : > { %p913_p9 = scmp.ne.s32.totalorder %s1146_s25, %s912_s11  ;;  %p921_p6 = scmp.lt.s32.totalorder %s912_s11, %s912_s11 }
  0x28   : > { %p915_p10 = pnand %p913_p9, %p901_p13  ;;  %p922_p4 = por %p921_p6, %p920_p2 }
  0x2a   : > { %p916_p1 = pneg %p915_p10 }
  0x2c   : > { %p923_p8 = pnand %p922_p4, %p916_p1 }
  0x2e   : > { %926 = shalt.err (!%p923_p8)
}
  0x2f   : > { %s1386_s12 = smov 128   ;;  %s1387_s13 = smov 8  }
  0x30   : > { %803 = dma.hbm_to_vmem [thread:$0]  (!%p1153_p11), %s1394_s2, 2048, %s1146_s25, [#allocation6], %s1386_s12, %s1386_s12, %s1387_s13  }
  0x31   : > { %p28_p1 = scmp.eq.s32.totalorder %s27_s29, 0  ;;  %p37_p2 = scmp.ne.s32.totalorder %s1057_s17, %s1053_s16 }
  0x32   : > { %p38_p4 = scmp.eq.s32.totalorder %s1061_s18, 0  ;;  %p816_p6 = scmp.lt.s32.totalorder %s1061_s18, 2 }
  0x33   : > { %s1192_s24 = scalar_select %p28_p1, %s1057_s17, %s30_s28  }
  0x34   : > { %p39_p8 = por %p38_p4, %p37_p2  ;;  %p1395_p10 = scmp.eq.s32.totalorder %s1123_s19, 1 }
  0x35   : > { %s1201_s26 = sand.u32 1, %s1057_s17   ;;  %s762_s5 = sshll.u32 %s1061_s18, 7 }
  0x36   : > { %p1196_p12 = por %p1395_p10, %p37_p2  ;;  %s724_s6 = sshll.u32 %s1201_s26, 3 }
  0x37   : > { %s1397_s0 = sld [smem:[#allocation13_spill]]  ;;  %s181_s28 = scalar_lea.vmem [#allocation2], %s724_s6 }
  0x38   : > { %s188_s8 = sshll.u32 %s181_s28, 4  ;;  %p1210_p11 = pnand %p816_p6, %p39_p8  ;;  %s1214_s8 = int_to_ptr.vmem [resolvable:$true] %s188_s8 }
  0x39   : > { %s178_s10 = scalar_lea.sflag [#allocation3], %s1201_s26 }
  0x3a   : > { %p929_p0 = pneg %p1210_p11 }
  0x3d   : > { %s1208_s29 = scalar_lea.hbm %s1397_s0, %s762_s5  ;;  %s932_s5 = scalar_lea.hbm %s1397_s0, 256 }
  0x3e   : > { %s927_s11 = scalar_lea.hbm %s1208_s29, 128  ;;  %p933_p7 = scmp.lt.u32.totalorder %s1208_s29, %s1397_s0 }
  0x3f   : > { %p928_p13 = scmp.ne.s32.totalorder %s1208_s29, %s927_s11  ;;  %p934_p9 = scmp.lt.u32.totalorder %s932_s5, %s927_s11 }
  0x40   : > { %p936_p2 = scmp.lt.u32.totalorder %s927_s11, %s1208_s29 }
  0x41   : > { %p930_p3 = pnand %p929_p0, %p928_p13  ;;  %p935_p1 = por %p934_p9, %p933_p7 }
  0x43   : > { %p931_p5 = pneg %p930_p3  ;;  %p937_p4 = por %p936_p2, %p935_p1 }
  0x45   : > { %p938_p6 = pnand %p937_p4, %p931_p5 }
  0x47   : > { %941 = shalt.err (!%p938_p6)
}
  0x48   : > { %s942_s25 = scalar_lea.vmem %s1214_s8, 128  ;;  %s1066_s28 = smov [#allocation2]  }
  0x49   : > { %p943_p8 = scmp.ne.s32.totalorder %s1214_s8, %s942_s25  ;;  %s947_s14 = sshll.u32 %s1066_s28, 4  ;;  %s948_s14 = int_to_ptr.vmem [resolvable:$false] %s947_s14 }
  0x4a   : > { %s949_s20 = scalar_lea.vmem %s948_s14, 256  ;;  %p950_p3 = scmp.lt.s32.totalorder %s1214_s8, %s948_s14 }
  0x4b   : > { %p945_p10 = pnand %p943_p8, %p929_p0  ;;  %p951_p7 = scmp.lt.s32.totalorder %s949_s20, %s942_s25 }
  0x4d   : > { %p946_p13 = pneg %p945_p10  ;;  %p952_p9 = por %p951_p7, %p950_p3 }
  0x4f   : > { %p953_p1 = pnand %p952_p9, %p946_p13 }
  0x51   : > { %956 = shalt.err (!%p953_p1)
}
  0x52   : > { %s1067_s11 = smov 64   ;;  %s1068_s5 = smov 4  }
  0x53   : > { %807 = dma.hbm_to_vmem [thread:$0]  (!%p1210_p11), %s1208_s29, 128, %s1214_s8, %s178_s10, %s1067_s11, %s1067_s11, %s1068_s5  }
  0x54   : > { %s198_s6 = sand.u32 1, %s1061_s18   ;;  %s727_s7 = sshll.u32 %s1201_s26, 4 }
  0x55   : > { %s763_s28 = sshll.u32 %s1061_s18, 8  ;;  %s202_s25 = scalar_lea.vmem [#allocation5], %s727_s7 }
  0x56   : > { %s209_s14 = sshll.u32 %s202_s25, 4  ;;  %s1250_s13 = scalar_lea.hbm %s1379_s1, %s763_s28  ;;  %s1252_s14 = int_to_ptr.vmem [resolvable:$true] %s209_s14 }
  0x57   : > { %s1254_s0 = scalar_lea.sflag [#allocation6], %s198_s6  ;;  %s957_s2 = scalar_lea.hbm %s1250_s13, 256 }
  0x58   : > { %p958_p5 = scmp.ne.s32.totalorder %s1250_s13, %s957_s2  ;;  %s962_s12 = scalar_lea.hbm %s1379_s1, 512 }
  0x59   : > { %p963_p6 = scmp.lt.u32.totalorder %s1250_s13, %s1379_s1  ;;  %p964_p8 = scmp.lt.u32.totalorder %s962_s12, %s957_s2 }
  0x5a   : > { %p960_p2 = pnand %p958_p5, %p929_p0  ;;  %p966_p13 = scmp.lt.u32.totalorder %s957_s2, %s1250_s13 }
  0x5b   : > { %p965_p10 = por %p964_p8, %p963_p6 }
  0x5c   : > { %p961_p4 = pneg %p960_p2 }
  0x5d   : > { %p967_p3 = por %p966_p13, %p965_p10 }
  0x5f   : > { %p968_p7 = pnand %p967_p3, %p961_p4 }
  0x61   : > { %971 = shalt.err (!%p968_p7)
}
  0x62   : > { %s972_s11 = scalar_lea.vmem %s1252_s14, 256  ;;  %s1069_s5 = smov [#allocation5]  }
  0x63   : > { %p973_p9 = scmp.ne.s32.totalorder %s1252_s14, %s972_s11  ;;  %s977_s6 = sshll.u32 %s1069_s5, 4  ;;  %s978_s6 = int_to_ptr.vmem [resolvable:$false] %s977_s6 }
  0x64   : > { %s979_s7 = scalar_lea.vmem %s978_s6, 512  ;;  %p980_p2 = scmp.lt.s32.totalorder %s1252_s14, %s978_s6 }
  0x65   : > { %p975_p1 = pnand %p973_p9, %p929_p0  ;;  %p981_p6 = scmp.lt.s32.totalorder %s979_s7, %s972_s11 }
  0x67   : > { %p976_p5 = pneg %p975_p1  ;;  %p982_p8 = por %p981_p6, %p980_p2 }
  0x69   : > { %p983_p10 = pnand %p982_p8, %p976_p5 }
  0x6b   : > { %986 = shalt.err (!%p983_p10)
}
  0x6c   : > { %s1399_s2 = smov 8   ;;  %s1400_s28 = smov 128  }
  0x6d   : > { %810 = dma.hbm_to_vmem [thread:$0]  (!%p1210_p11), %s1250_s13, 256, %s1252_s14, %s1254_s0, %s1400_s28, %s1400_s28, %s1399_s2  }
  0x6e   : > { %p1401_p0 = scmp.ne.s32.totalorder %s1392_s23, 0 }
  0x6f   : > { %s1286_s25 = sand.u32 (!%p1401_p0), 1, %s1053_s16   ;;  %p1402_p4 = scmp.ne.s32.totalorder (!%p1401_p0), %s1390_s21, 0 }
  0x70   : > { %221 = sbr.rel (%p1401_p0) target bundleno = 1112 (0x458), region = 36  ;;  %s731_s20 = sshll.u32 (!%p1401_p0), %s1286_s25, 3 }
  0x71   : > { %s224_s26 = scalar_lea.sflag (!%p1401_p0), [#allocation3], %s1286_s25  ;;  %s1290_s29 = scalar_lea.vmem (!%p1401_p0), [#allocation2], %s731_s20 }
  0x77   : > { %1032 = dma.done.wait (%p1402_p4), %s224_s26, 128  }
  0x78   : > { %1034 = vsyncadd (%p1402_p4), %s224_s26, 4294967168  ;;  %s232_s0 = sand.u32 1, %s1123_s19   ;;  %s732_s23 = sshll.u32 %s1286_s25, 4 }
  0x79   : > { %s233_s13 = scalar_lea.sflag [#allocation6], %s232_s0  ;;  %s1300_s9 = scalar_lea.vmem [#allocation5], %s732_s23 }
  0x7a   : > { %1036 = dma.done.wait (%p1402_p4), %s233_s13, 256  }
  0x7b   : > { %1038 = vsyncadd (%p1402_p4), %s233_s13, 4294967040  ;;  %p1403_p11 = scmp.eq.s32.totalorder %s1123_s19, 0 }
  0x7d   : > { %1040 = dma.done.wait (%p1403_p11), [#allocation6], 2048   ;;  %p1404_p13 = pmov %p1403_p11 }
  0x7e   : > { %v1070_v0 = vmov 0   ;;  %v867_v1 = vld [vmem:[#allocation7 + $0x4] ss:$8 sps:$4 sm:$0xff]   ;;  %v869_v2 = vld [vmem:[#allocation7] ss:$8 sps:$4 sm:$0xff]   ;;  %v293_v22 = vlaneseq  ;;  %vm439_vm0 = vcmask 523264  }
  0x7f   : > { %1042 = vsyncadd (%p1404_p13), [#allocation6], 4294965248  ;;  %421 = vmatprep.mubr.bf16.mxu0 %v1070_v0  ;;  %389 = vmatprep.subr.bf16.mxu0 %v867_v1  ;;  %v870_v3 = vld [vmem:[#allocation7 + $0x14] ss:$8 sps:$4 sm:$0xff]   ;;  %v872_v4 = vld [vmem:[#allocation7 + $0x10] ss:$8 sps:$4 sm:$0xff]  }
  0x80   : > { %390 = vmatpush1.bf16.msra.mxu0 %v869_v2  ;;  %v873_v5 = vld [vmem:[#allocation7 + $0x24] ss:$8 sps:$4 sm:$0xff]   ;;  %v875_v6 = vld [vmem:[#allocation7 + $0x20] ss:$8 sps:$4 sm:$0xff]   ;;  %v876_v7 = vld [vmem:[#allocation7 + $0x34] ss:$8 sps:$4 sm:$0xff]  }
  0x81   : > { %391 = vmatprep.subr.bf16.mxu0 %v870_v3  ;;  %v878_v8 = vld [vmem:[#allocation7 + $0x30] ss:$8 sps:$4 sm:$0xff]   ;;  %v879_v9 = vld [vmem:[#allocation7 + $0x44] ss:$8 sps:$4 sm:$0xff]   ;;  %v881_v10 = vld [vmem:[#allocation7 + $0x40] ss:$8 sps:$4 sm:$0xff]  }
  0x82   : > { %v882_v11 = vld [vmem:[#allocation7 + $0x54] ss:$8 sps:$4 sm:$0xff]   ;;  %v884_v12 = vld [vmem:[#allocation7 + $0x50] ss:$8 sps:$4 sm:$0xff]   ;;  %v885_v13 = vld [vmem:[#allocation7 + $0x64] ss:$8 sps:$4 sm:$0xff]  }
  0x83   : > { %v887_v14 = vld [vmem:[#allocation7 + $0x60] ss:$8 sps:$4 sm:$0xff]   ;;  %v271_v15 = vld [vmem:[%s1290_s29] sm:$0xf]  ;;  %v272_v16 = vld [vmem:[%s1290_s29 + $0x4] sm:$0xf] }
  0x84   : > { %392 = vmatpush1.bf16.msra.mxu0 %v872_v4  ;;  %v888_v17 = vld [vmem:[#allocation7 + $0x74] ss:$8 sps:$4 sm:$0xff]   ;;  %v273_v18 = vmax.bf16 %v1070_v0, %v271_v15  ;;  %v274_v19 = vmax.bf16 %v1070_v0, %v272_v16  ;;  %v890_v20 = vld [vmem:[#allocation7 + $0x70] ss:$8 sps:$4 sm:$0xff]   ;;  %v294_v23 = vshrl.u32 %v293_v22, 7  ;;  %s1071_s12 = smov 64   ;;  %vm785_vm1 = vmpackc.low %vm439_vm0, %vm439_vm0 }
  0x85   : > { %393 = vmatprep.subr.bf16.mxu0 %v873_v5  ;;  %v291_v25 = vld [vmem:[%s1381_s3] sm:$0x3]  ;;  %v1072_v43 = vmov 0.0   ;;  %vm525_vm2 = vcmask 130048   ;;  %vm1073_vm3 = vmmov 0   ;;  %v539_v56 = vld [vmem:[%s1300_s9 + $0x8] sm:$0xff] }
  0x86   : > { %v735_v21 = vcombine.low %v273_v18, %v274_v19  ;;  %v295_v24 = vsub.s32 0, %v294_v23  ;;  %v299_v26 = vsub.s32 1, %v294_v23  ;;  %v538_v57 = vld [vmem:[%s1300_s9] sm:$0xff]  ;;  %s269_s8 = scalar_lea.vmem [#allocation8], %s732_s23  ;;  %s764_s11 = sshll.u32 %s1123_s19, 8 }
  0x87   : > { %s615_s10 = sshll.u32 %s269_s8, 4  ;;  %s1334_s7 = scalar_lea.hbm %s1382_s4, %s764_s11  ;;  %s1329_s10 = int_to_ptr.vmem [resolvable:$true] %s615_s10 }
  0x88   : > { %394 = vmatpush1.bf16.msra.mxu0 %v875_v6  ;;  %v296_v27 = vrot.slane %v291_v25, %v295_v24  ;;  %v300_v29 = vrot.slane %v291_v25, %v299_v26  ;;  %s602_s19 = scalar_lea.sflag [#allocation4], %s1286_s25  ;;  %s987_s2 = scalar_lea.vmem %s1329_s10, 256 }
  0x89   : > { %395 = vmatprep.subr.bf16.mxu0 %v876_v7  ;;  %p988_p3 = scmp.ne.s32.totalorder %s1329_s10, %s987_s2  ;;  %s1074_s28 = smov [#allocation8]  }
  0x8a   : > { %s991_s20 = sshll.u32 %s1074_s28, 4  ;;  %s992_s20 = int_to_ptr.vmem [resolvable:$false] %s991_s20 }
  0x8b   : > { %p989_p7 = pnand %p988_p3, %p1196_p12  ;;  %s993_s26 = scalar_lea.vmem %s992_s20, 512 }
  0x8c   : > { %396 = vmatpush1.bf16.msra.mxu0 %v878_v8  ;;  %p994_p1 = scmp.lt.s32.totalorder %s1329_s10, %s992_s20  ;;  %p995_p5 = scmp.lt.s32.totalorder %s993_s26, %s987_s2 }
  0x8d   : > { %397 = vmatprep.subr.bf16.mxu0 %v879_v9  ;;  %p990_p9 = pneg %p989_p7 }
  0x8e   : > { %p996_p2 = por %p995_p5, %p994_p1 }
  0x90   : > { %398 = vmatpush1.bf16.msra.mxu0 %v881_v10  ;;  %p997_p6 = pnand %p996_p2, %p990_p9 }
  0x91   : > { %399 = vmatprep.subr.bf16.mxu0 %v882_v11 }
  0x94   : > { %400 = vmatpush1.bf16.msra.mxu0 %v884_v12 }
  0x95   : > { %401 = vmatprep.subr.bf16.mxu0 %v885_v13 }
  0x98   : > { %402 = vmatpush1.bf16.msra.mxu0 %v887_v14 }
  0x99   : > { %403 = vmatprep.subr.bf16.mxu0 %v888_v17 }
  0x9c   : > { %404 = vmatpush1.bf16.msra.mxu0 %v890_v20 }
  0x9f   : > { %422 = vmatmul.mubr.bf16.vlgmr.msra.gmra.mrb[0].mxu0 %v735_v21 }
 0x172   : > { %v423_v28 = vpop.f32.mrb[0].mxu0 }
 0x173   : > { %v424_v30 = vadd.f32 %v423_v28, %v296_v27  ;;  %v425_v31 = vpop.f32.mrb[1].mxu0 }
 0x174   : > { %v427_v32 = vpop.f32.mrb[2].mxu0  ;;  %v426_v35 = vadd.f32 %v425_v31, %v300_v29 }
 0x175   : > { %v428_v33 = vadd.f32 %v427_v32, %v296_v27  ;;  %v429_v34 = vpop.f32.mrb[3].mxu0  ;;  %775 = vmatprep.mubr.msk.f32.mxu1 %vm439_vm0, %v424_v30 }
 0x176   : > { %v430_v36 = vadd.f32 %v429_v34, %v300_v29 }
 0x177   : > { %v862_v37 = vpack.i.bf16 %v428_v33, %v424_v30 }
 0x178   : > { %v432_v38 = vpack.c.bf16 %v430_v36, %v426_v35 }
 0x179   : > { %863 = vrot.lane.b32.xlu0 %v862_v37, %s1071_s12 }
 0x1eb   : > { %v864_v39 = vpop.permute.xlu0 %863 }
 0x1ec   : > { %v866_v40 = vunpack.i.h.bf16 %v864_v39  ;;  %v865_v41 = vunpack.i.l.bf16 %v864_v39 }
 0x1ee   : > { %v784_v42 = vpack.c.bf16 %v866_v40, %v865_v41 }
 0x1f0   : > { %786 = vmatprep.subr.msk.bf16.mxu1 %vm785_vm1, %v784_v42 }
 0x1f1   : > { %789 = vmatpush3.bf16.xpose.msk.msra.mxu1 %vm785_vm1, %v784_v42 }
 0x1f2   : > { %778 = vmatprep.subr.bf16.mxu1 %v1072_v43 }
 0x1f8   : > { %776 = vmatmul.mubr.msk.f32.vlgmr.msra.gmra.mrb[0].mxu1 %vm439_vm0, %v428_v33 }
 0x1f9   : > { %779 = vmatpush3.bf16.msra.mxu1 %v432_v38  ;;  %780 = vmatprep.mubr.msk.bf16.mxu1 %vm1073_vm3, %v1072_v43 }
 0x2cb   : > { %v777_v44 = vpop.f32.mrb[0].mxu1 }
 0x2cc   : > { %v524_v45 = vmul.f32 0.125, %v777_v44  ;;  %v514_v46 = vpop.f32.mrb[1].mxu1 }
 0x2cd   : > { %v523_v47 = vmul.f32 0.125, %v514_v46 }
 0x2ce   : > { %v529_v48 = vsel %vm525_vm2, %v524_v45, -inf }
 0x2cf   : > { %530 = vmax.xlane.f32.xlu1 %v529_v48  ;;  %v526_v49 = vsel %vm525_vm2, %v523_v47, -inf }
 0x2d0   : > { %527 = vmax.xlane.f32.xlu0 %v526_v49 }
 0x35c   : > { %v531_v50 = vpop.xlane.xlu1 %530 }
 0x35d   : > { %v533_v51 = vsub.f32 %v524_v45, %v531_v50  ;;  %v528_v52 = vpop.xlane.xlu0 %527 }
 0x35e   : > { %v532_v53 = vsub.f32 %v523_v47, %v528_v52 }
 0x35f   : > { %v536_v54 = vmul.f32 1.442695, %v533_v51 }
 0x360   : > { %v534_v55 = vmul.f32 1.442695, %v532_v53 }
 0x361   : > { %891 = vpow2.f32 %v536_v54 }
 0x362   : > { %893 = vpow2.f32 %v534_v55 }
 0x36b   : > { %v892_v58 = vpop.eup %891 }
 0x36c   : > { %v894_v59 = vpop.eup %893  ;;  %v541_v60 = vmul.f32 %v892_v58, %v539_v56 }
 0x36d   : > { %v540_v61 = vmul.f32 %v894_v59, %v538_v57 }
 0x36e   : > { %v545_v0 = vsel %vm525_vm2, %v541_v60, 0.0 }
 0x36f   : > { %v542_v62 = vsel %vm525_vm2, %v540_v61, 0.0  ;;  %v552_v63 = vpack.c.bf16 %v541_v60, %v540_v61 }
 0x370   : > { %543 = vadd.xlane.f32.xlu1 %v542_v62 }
 0x371   : > { %781 = vmatmul.mubr.msk.bf16.vlgmr.msra.gmra.mrb[4].mxu1 %vm525_vm2, %v552_v63 }
 0x374   : > { %546 = vadd.xlane.f32.xlu1 %v545_v0 }
 0x3fd   : > { %v544_v1 = vpop.xlane.xlu1 %543 }
 0x3fe   : > { %v548_v3 = vadd.f32 1e-10, %v544_v1 }
 0x400   : > { %895 = vrcp.f32 %v548_v3 }
 0x401   : > { %v547_v2 = vpop.xlane.xlu1 %546 }
 0x402   : > { %v549_v4 = vadd.f32 1e-10, %v547_v2 }
 0x404   : > { %897 = vrcp.f32 %v549_v4 }
 0x40a   : > { %v896_v5 = vpop.eup %895 }
 0x40e   : > { %v898_v9 = vpop.eup %897 }
 0x444   : > { %v590_v6 = vpop.f32.mrb[4].mxu1 }
 0x445   : > { %v597_v7 = vmul.f32 %v896_v5, %v590_v6  ;;  %v782_v8 = vpop.f32.mrb[5].mxu1 }
 0x446   : > { %v593_v10 = vpop.f32.mrb[6].mxu1 }
 0x447   : > { %599 = vst [vmem:[%s269_s8] sm:$0xff] %v597_v7  ;;  %v598_v11 = vmul.f32 %v898_v9, %v593_v10  ;;  %v783_v12 = vpop.f32.mrb[7].mxu1 }
 0x449   : > { %600 = vst [vmem:[%s269_s8 + $0x8] sm:$0xff] %v598_v11 }
 0x44a   : > { %1000 = shalt.err (!%p997_p6)
}
 0x44b   : > { %s1001_s29 = scalar_lea.hbm %s1334_s7, 256  ;;  %s1005_s13 = scalar_lea.hbm %s1382_s4, 512 }
 0x44c   : > { %p1002_p8 = scmp.ne.s32.totalorder %s1334_s7, %s1001_s29  ;;  %p1006_p4 = scmp.lt.u32.totalorder %s1334_s7, %s1382_s4 }
 0x44d   : > { %p1007_p11 = scmp.lt.u32.totalorder %s1005_s13, %s1001_s29  ;;  %p1009_p3 = scmp.lt.u32.totalorder %s1001_s29, %s1334_s7 }
 0x44e   : > { %p1003_p10 = pnand %p1002_p8, %p1196_p12 }
 0x44f   : > { %p1008_p13 = por %p1007_p11, %p1006_p4 }
 0x450   : > { %p1004_p0 = pneg %p1003_p10 }
 0x451   : > { %p1010_p7 = por %p1009_p3, %p1008_p13 }
 0x453   : > { %p1011_p9 = pnand %p1010_p7, %p1004_p0 }
 0x455   : > { %1014 = shalt.err (!%p1011_p9)
}
 0x456   : > { %s1075_s14 = smov 128   ;;  %s1076_s12 = smov 8  }
 0x457   : > { %798 = dma.vmem_to_hbm [thread:$0]  (%p1196_p12), %s1329_s10, 256, %s1334_s7, %s602_s19, %s1075_s14, %s1075_s14, %s1076_s12  }
 0x458 PF: > { %s630_s8 = sand.u32 1, %s1049_s15   ;;  %p1405_p1 = scmp.ne.s32.totalorder %s1391_s22, 0 }
 0x459   : > { %p1406_p5 = scmp.ge.s32.totalorder %s1061_s18, 2  ;;  %s631_s11 = scalar_lea.sflag [#allocation4], %s630_s8 }
 0x45b   : > { %p812_p2 = pnand %p1406_p5, %p1405_p1 }
 0x45d   : > { %1044 = dma.done.wait (!%p812_p2), %s631_s11, 256  }
 0x45e   : > { %1046 = vsyncadd (!%p812_p2), %s631_s11, 4294967040  ;;  %p20_p6 = scmp.ge.s32.totalorder %s1158_s27, 4   ;;  %s1407_s15 = smov %s1053_s16 }
 0x45f   : > { %s1408_s16 = smov %s1057_s17  ;;  %s1409_s17 = smov %s1192_s24 }
 0x460   : > { %s1410_s18 = smov %s1158_s27  ;;  %22 = sbr.rel (!%p20_p6) target bundleno = 10 (0xa), region = 98 }
 0x467   :  { %636 = vsyncpa [#allocation3], 1 }
 0x468   :  { %638 = vsyncpa [#allocation3 + $0x1], 1 }
 0x469   :  { %639 = vsyncpa [#allocation6], 1 }
 0x46a   :  { %641 = vsyncpa [#allocation6 + $0x1], 1 }
 0x46b   :  { %642 = vsyncpa [#allocation4], 1 }
 0x46c   :  { %644 = vsyncpa [#allocation4 + $0x1], 1 }

</bundles_post_ra>
